<compile_context>
chip_gen: v7x
topology: tpu7x:2x2x1
jax: 0.10.0
libtpu: 0.0.40
codegen_flags: <defaults>
</compile_context>

<pallas_src>
import functools

import jax
import jax.numpy as jnp
from jax.experimental import pallas as pl
from jax.experimental.pallas import tpu as pltpu

_LANE = 128
_SUBLANE = 8


def _hca_kernel(x_ref, subc_t_ref, w_bd_ref, out_ref, *, num_clusters,
                num_subclasses):
    C, S = num_clusters, num_subclasses

    x = x_ref[...]                # (TB, D), input dtype (bf16 fast path kept)
    subc_t = subc_t_ref[...]      # (D, C*S), input dtype

    # Subclass scores: one dense MXU matmul, f32 accumulation -> (TB, C*S).
    scores = jnp.dot(x, subc_t, preferred_element_type=jnp.float32)
    tb = scores.shape[0]

    # Group-wise softmax over subclasses (reshape only for the reduction).
    s3 = scores.reshape(tb, C, S)
    m = jnp.max(s3, axis=-1, keepdims=True)
    e = jnp.exp(s3 - m)
    denom = jnp.sum(e, axis=-1, keepdims=True)
    attn = e * pl.reciprocal(denom, approx=True)           # (TB, C, S) f32

    # Epilogue: block-diagonal fold of (attention_weights, class_centroids).
    # w_bd[c*S + s, c] = sum_d attention_weights[s, d] * class_centroids[c, d],
    # zero elsewhere; padded to C_pad lanes so the store is an unmasked vst.
    attn2 = attn.reshape(tb, C * S).astype(w_bd_ref.dtype)
    out = jnp.dot(attn2, w_bd_ref[...], preferred_element_type=jnp.float32)

    out_ref[...] = out.astype(out_ref.dtype)                # (TB, C_pad)


def hierarchical_cross_attention(x, subclass_centroids, attention_weights,
                                 class_centroids, *, block_b=None):
    """Forward pass of HierarchicalCrossAttention.

    x:                   (B, D)
    subclass_centroids:  (C, S, D)
    attention_weights:   (S, D)
    class_centroids:     (C, D)
    returns:             (B, C)   (or (B,) if C == 1, matching .squeeze(-1))
    """
    B, D = x.shape
    C, S, D2 = subclass_centroids.shape
    assert D == D2
    dtype = x.dtype

    # --- wrapper-side layout plumbing (cheap XLA ops, outside the kernel) ---
    # Lane-contiguous 2-D RHS for the scores matmul: (D, C*S).
    subc_t = jnp.transpose(subclass_centroids.reshape(C * S, D)).astype(dtype)

    # W[c, s] = sum_d class_centroids[c, d] * attention_weights[s, d]
    W = jnp.einsum("cd,sd->cs", class_centroids.astype(jnp.float32),
                   attention_weights.astype(jnp.float32))
    C_pad = max(_LANE, ((C + _LANE - 1) // _LANE) * _LANE)
    cols = jnp.arange(C * S) // S                              # owning cluster
    w_bd = (W.reshape(C * S, 1)
            * jax.nn.one_hot(cols, C_pad, dtype=jnp.float32)).astype(dtype)

    # Batch tile: single tile for small B, otherwise 512 sublane-aligned rows.
    # (Footprint is tiny; re-derive only if D grows very large on v7x.)
    if block_b is None:
        block_b = B if B <= 512 else 512
    if block_b < B:
        block_b = max(_SUBLANE, (block_b // _SUBLANE) * _SUBLANE)
    grid = (pl.cdiv(B, block_b),)

    kernel = functools.partial(_hca_kernel, num_clusters=C, num_subclasses=S)

    out_padded = pl.pallas_call(
        kernel,
        out_shape=jax.ShapeDtypeStruct((B, C_pad), dtype),
        grid_spec=pltpu.PrefetchScalarGridSpec(
            num_scalar_prefetch=0,
            grid=grid,
            in_specs=[
                pl.BlockSpec((block_b, D), lambda i: (i, 0)),     # batch-tiled
                pl.BlockSpec((D, C * S), lambda i: (0, 0)),       # resident
                pl.BlockSpec((C * S, C_pad), lambda i: (0, 0)),   # resident
            ],
            out_specs=pl.BlockSpec((block_b, C_pad), lambda i: (i, 0)),
        ),
        compiler_params=pltpu.CompilerParams(
            dimension_semantics=("parallel",),
            vmem_limit_bytes=32 * 1024 * 1024,
        ),
    )(x, subc_t, w_bd)

    out = out_padded[:, :C]
    # torch's .squeeze(-1): only squeezes if num_clusters == 1
    if C == 1:
        out = jnp.squeeze(out, axis=-1)
    return out


def _kaiming_normal(key, shape, mode="fan_out"):
    # PyTorch kaiming_normal_(nonlinearity='relu'): std = sqrt(2) / sqrt(fan)
    if len(shape) >= 2:
        receptive = 1
        for s in shape[2:]:
            receptive *= s
        fan_out = shape[0] * receptive
    else:
        fan_out = shape[0]
    std = (2.0 ** 0.5) / (fan_out ** 0.5)
    return std * jax.random.normal(key, shape, dtype=jnp.float32)


def _reference(x, subc, attw, classc):
    C, S, D = subc.shape
    scores = jnp.einsum("ik,lk->il", x, subc.reshape(-1, D))
    attn = jax.nn.softmax(scores.reshape(-1, C, S), axis=2)
    attended = jnp.einsum("bnm,mk->bnk", attn, attw)
    sim = jnp.einsum("bik,kj->bij", attended, classc.T)
    diag = jnp.diagonal(sim, axis1=-2, axis2=-1)
    if C == 1:
        diag = jnp.squeeze(diag, axis=-1)
    return diag


if __name__ == "__main__":
    # Small shapes consistent with the module's forward (x is (B, input_dim)).
    B = 8
    input_dim = 32
    num_clusters = 4
    num_subclasses = 8

    key = jax.random.PRNGKey(0)
    kx, k1, k2, k3 = jax.random.split(key, 4)

    x = jax.random.normal(kx, (B, input_dim), dtype=jnp.float32)
    class_centroids = _kaiming_normal(k1, (num_clusters, input_dim))
    subclass_centroids = _kaiming_normal(
        k2, (num_clusters, num_subclasses, input_dim))
    attention_weights = _kaiming_normal(k3, (num_subclasses, input_dim))

    out = hierarchical_cross_attention(
        x, subclass_centroids, attention_weights, class_centroids)
    out = jax.block_until_ready(out)

    ref = _reference(x, subclass_centroids, attention_weights, class_centroids)
    assert out.shape == ref.shape, (out.shape, ref.shape)
    # Tolerance covers the EUP approximate-reciprocal softmax denominator.
    assert jnp.allclose(out, ref, atol=5e-3, rtol=5e-3), "mismatch vs reference"

    print("KERNEL_OK")
</pallas_src>

<mosaic_0001>
module attributes {stable_mosaic.version = 11 : i64} {
  func.func @_hca_kernel(%arg0: i32, %arg1: memref<8x32xf32, #tpu.memory_space<vmem>>, %arg2: memref<32x32xf32, #tpu.memory_space<vmem>>, %arg3: memref<32x128xf32, #tpu.memory_space<vmem>>, %arg4: memref<8x128xf32, #tpu.memory_space<vmem>>) attributes {dimension_semantics = [#tpu.dimension_semantics<parallel>], iteration_bounds = array<i64: 1>, scalar_prefetch = 0 : i64, scratch_operands = 0 : i64, tpu.core_type = #tpu.core_type<tc>, window_params = [{transform_indices = @transform_0, window_bounds = array<i64: 8, 32>}, {pipeline_mode = #tpu.pipeline_mode<synchronous>, transform_indices = @transform_1, window_bounds = array<i64: 32, 32>}, {pipeline_mode = #tpu.pipeline_mode<synchronous>, transform_indices = @transform_2, window_bounds = array<i64: 32, 128>}, {transform_indices = @transform_3, window_bounds = array<i64: 8, 128>}]} {
    %c0 = arith.constant 0 : index
    %c0_0 = arith.constant 0 : index
    %0 = vector.load %arg1[%c0, %c0_0] : memref<8x32xf32, #tpu.memory_space<vmem>>, vector<8x32xf32>
    %c0_1 = arith.constant 0 : index
    %c0_2 = arith.constant 0 : index
    %1 = vector.load %arg2[%c0_1, %c0_2] : memref<32x32xf32, #tpu.memory_space<vmem>>, vector<32x32xf32>
    %cst = arith.constant dense<0.000000e+00> : vector<8x32xf32>
    %2 = tpu.matmul %0, %1, %cst {dimension_numbers = #tpu.dot_dimension_numbers<[1], [0], [0], [1], [0, 0, 1, 1], [], []>} : vector<8x32xf32>, vector<32x32xf32>, vector<8x32xf32> -> vector<8x32xf32>
    %3 = vector.shape_cast %2 : vector<8x32xf32> to vector<8x4x8xf32>
    %cst_3 = arith.constant dense<0xFF800000> : vector<8x4xf32>
    %4 = vector.multi_reduction <maximumf>, %3, %cst_3 [2] : vector<8x4x8xf32> to vector<8x4xf32>
    %5 = vector.shape_cast %4 : vector<8x4xf32> to vector<8x4x1xf32>
    %6 = vector.broadcast %5 : vector<8x4x1xf32> to vector<8x4x8xf32>
    %7 = arith.subf %3, %6 : vector<8x4x8xf32>
    %8 = math.exp %7 : vector<8x4x8xf32>
    %cst_4 = arith.constant dense<0.000000e+00> : vector<8x4xf32>
    %9 = vector.multi_reduction <add>, %8, %cst_4 [2] : vector<8x4x8xf32> to vector<8x4xf32>
    %10 = vector.shape_cast %9 : vector<8x4xf32> to vector<8x4x1xf32>
    %11 = tpu.reciprocal %10 {approx = true} : vector<8x4x1xf32> -> vector<8x4x1xf32>
    %12 = vector.broadcast %11 : vector<8x4x1xf32> to vector<8x4x8xf32>
    %13 = arith.mulf %8, %12 : vector<8x4x8xf32>
    %14 = vector.shape_cast %13 : vector<8x4x8xf32> to vector<8x32xf32>
    %c0_5 = arith.constant 0 : index
    %c0_6 = arith.constant 0 : index
    %15 = vector.load %arg3[%c0_5, %c0_6] : memref<32x128xf32, #tpu.memory_space<vmem>>, vector<32x128xf32>
    %cst_7 = arith.constant dense<0.000000e+00> : vector<8x128xf32>
    %16 = tpu.matmul %14, %15, %cst_7 {dimension_numbers = #tpu.dot_dimension_numbers<[1], [0], [0], [1], [0, 0, 1, 1], [], []>} : vector<8x32xf32>, vector<32x128xf32>, vector<8x128xf32> -> vector<8x128xf32>
    %c0_8 = arith.constant 0 : index
    %c0_9 = arith.constant 0 : index
    %17 = vector.load %arg4[%c0_8, %c0_9] : memref<8x128xf32, #tpu.memory_space<vmem>>, vector<8x128xf32>
    tpu.vector_store %arg4[%c0_8, %c0_9], %16 {strides = array<i32>} : memref<8x128xf32, #tpu.memory_space<vmem>>, vector<8x128xf32>,
    return
  }
  func.func @transform_0(%arg0: i32) -> (i32, i32) {
    %c0_i32 = arith.constant 0 : i32
    %c0_i32_0 = arith.constant 0 : i32
    return %arg0, %c0_i32 : i32, i32
  }
  func.func @transform_1(%arg0: i32) -> (i32, i32) {
    %c0_i32 = arith.constant 0 : i32
    %c0_i32_0 = arith.constant 0 : i32
    %c0_i32_1 = arith.constant 0 : i32
    return %c0_i32, %c0_i32_0 : i32, i32
  }
  func.func @transform_2(%arg0: i32) -> (i32, i32) {
    %c0_i32 = arith.constant 0 : i32
    %c0_i32_0 = arith.constant 0 : i32
    %c0_i32_1 = arith.constant 0 : i32
    return %c0_i32, %c0_i32_0 : i32, i32
  }
  func.func @transform_3(%arg0: i32) -> (i32, i32) {
    %c0_i32 = arith.constant 0 : i32
    %c0_i32_0 = arith.constant 0 : i32
    return %arg0, %c0_i32 : i32, i32
  }
}

</mosaic_0001>

<bundles_post_ra>
// kernel: tpu_custom_call.1
= control target key start
LH: loop header
LB: loop body
LE: loop exit
PB: predicated region body
PF: predicated region fallthrough
CT: control target
= control target key end

     0   :  { %8 = vsyncpa [#allocation3], 0  ;;  %s807_s0 = inlined_call_operand.hbm [shape: f32[8,32], index: 0, kind: input, shape index: {}]   ;;  %s808_s1 = inlined_call_operand.hbm [shape: f32[32,32], index: 1, kind: input, shape index: {}]   ;;  %s809_s2 = inlined_call_operand.hbm [shape: f32[32,128], index: 2, kind: input, shape index: {}]   ;;  %s810_s3 = inlined_call_operand.hbm [shape: f32[8,128], index: 3, kind: output, shape index: {}]  }
   0x1   :  { %9 = vsyncpa [#allocation6], 0 }
   0x2   :  { %10 = vsyncpa [#allocation4], 0  ;;  %s668_s12 = smov [#allocation5]   ;;  %s574_s16 = scalar_lea.hbm %s808_s1, 512 }
   0x3   :  { %s26_s13 = sshll.u32 %s668_s12, 4  ;;  %p575_p0 = scmp.ne.s32.totalorder %s808_s1, %s574_s16  ;;  %s27_s13 = int_to_ptr.vmem [resolvable:$true] %s26_s13 }
   0x4   :  { %p578_p1 = scmp.lt.u32.totalorder %s574_s16, %s808_s1 }
   0x6   :  { %p580_p2 = pnand %p578_p1, %p575_p0 }
   0x8   :  { %583 = shalt.err (!%p580_p2)
}
   0x9   :  { %s584_s21 = scalar_lea.vmem %s27_s13, 512  ;;  %p589_p4 = scmp.lt.s32.totalorder %s27_s13, %s27_s13 }
   0xa   :  { %p585_p3 = scmp.ne.s32.totalorder %s27_s13, %s584_s21  ;;  %p590_p5 = scmp.lt.s32.totalorder %s584_s21, %s584_s21 }
   0xc   :  { %p591_p6 = por %p590_p5, %p589_p4 }
   0xe   :  { %p592_p7 = pnand %p591_p6, %p585_p3 }
  0x10   :  { %595 = shalt.err (!%p592_p7)
}
  0x11   :  { %s669_s22 = smov 128   ;;  %s670_s23 = smov 8  }
  0x12   :  { %32 = dma.hbm_to_vmem [thread:$0]  %s808_s1, 512, %s27_s13, [#allocation6], %s669_s22, %s669_s22, %s670_s23  }
  0x13   :  { %s671_s26 = smov [#allocation2]   ;;  %s672_s28 = smov [#allocation7]  }
  0x14   :  { %s17_s27 = sshll.u32 %s671_s26, 4  ;;  %s38_s29 = sshll.u32 %s672_s28, 4  ;;  %s18_s27 = int_to_ptr.vmem [resolvable:$true] %s17_s27  ;;  %s39_s29 = int_to_ptr.vmem [resolvable:$true] %s38_s29 }
  0x15   :  { %s596_s5 = scalar_lea.hbm %s807_s0, 128 }
  0x16   :  { %p597_p8 = scmp.ne.s32.totalorder %s807_s0, %s596_s5  ;;  %p600_p9 = scmp.lt.u32.totalorder %s596_s5, %s807_s0 }
  0x18   :  { %p602_p10 = pnand %p600_p9, %p597_p8 }
  0x1a   :  { %605 = shalt.err (!%p602_p10)
}
  0x1b   :  { %s606_s1 = scalar_lea.vmem %s18_s27, 128  ;;  %p611_p12 = scmp.lt.s32.totalorder %s18_s27, %s18_s27 }
  0x1c   :  { %p607_p11 = scmp.ne.s32.totalorder %s18_s27, %s606_s1  ;;  %p612_p13 = scmp.lt.s32.totalorder %s606_s1, %s606_s1 }
  0x1e   :  { %p613_p0 = por %p612_p13, %p611_p12 }
  0x20   :  { %p614_p1 = pnand %p613_p0, %p607_p11 }
  0x22   :  { %617 = shalt.err (!%p614_p1)
}
  0x23   :  { %20 = dma.hbm_to_vmem [thread:$0]  %s807_s0, 128, %s18_s27, [#allocation3]  }
  0x24   :  { %s618_s14 = scalar_lea.hbm %s809_s2, 512 }
  0x25   :  { %p619_p2 = scmp.ne.s32.totalorder %s809_s2, %s618_s14  ;;  %p622_p3 = scmp.lt.u32.totalorder %s618_s14, %s809_s2 }
  0x27   :  { %p624_p4 = pnand %p622_p3, %p619_p2 }
  0x29   :  { %627 = shalt.err (!%p624_p4)
}
  0x2a   :  { %s628_s19 = scalar_lea.vmem %s39_s29, 512  ;;  %p633_p6 = scmp.lt.s32.totalorder %s39_s29, %s39_s29 }
  0x2b   :  { %p629_p5 = scmp.ne.s32.totalorder %s39_s29, %s628_s19  ;;  %p634_p7 = scmp.lt.s32.totalorder %s628_s19, %s628_s19 }
  0x2d   :  { %p635_p8 = por %p634_p7, %p633_p6 }
  0x2f   :  { %p636_p9 = pnand %p635_p8, %p629_p5 }
  0x31   :  { %639 = shalt.err (!%p636_p9)
}
  0x32   :  { %44 = dma.hbm_to_vmem [thread:$0]  %s809_s2, 512, %s39_s29, [#allocation6], %s669_s22, %s669_s22, %s670_s23  }
  0x33   :  { %662 = dma.done.wait [#allocation3], 128  }
  0x34   :  { %663 = vsyncadd [#allocation3], 4294967168 }
  0x35   :  { %664 = dma.done.wait [#allocation6], 1024  }
  0x36   :  { %665 = vsyncadd [#allocation6], 4294966272  ;;  %v673_v0 = vmov 0.0|0.0   ;;  %vm674_vm0 = vmmov 0   ;;  %v675_v1 = vmov 0.0   ;;  %v55_v2 = vld [vmem:[#allocation5] sm:$0xff]  ;;  %v148_v13 = vlaneseq }
  0x37   :  { %514 = vmatprep.subr.bf16.mxu0 %v673_v0  ;;  %500 = vmatprep.mubr.msk.f32.mxu0 %vm674_vm0, %v675_v1  ;;  %v56_v3 = vld [vmem:[#allocation5 + $0x8] sm:$0xff]  ;;  %v57_v4 = vld [vmem:[#allocation5 + $0x10] sm:$0xff]  ;;  %v58_v6 = vld [vmem:[#allocation5 + $0x18] sm:$0xff]  ;;  %vm59_vm1 = vcmask 261120   ;;  %s676_s2 = smov 104   ;;  %s677_s21 = smov 120  }
  0x38   :  { %520 = vmatprep.subr.bf16.mxu1 %v673_v0  ;;  %511 = vmatprep.mubr.msk.f32.mxu1 %vm674_vm0, %v675_v1  ;;  %v515_v5 = vpack.c.bf16 %v56_v3, %v55_v2  ;;  %v518_v7 = vpack.c.bf16 %v58_v6, %v57_v4  ;;  %v54_v8 = vld [vmem:[#allocation2] sm:$0xff]  ;;  %s678_s22 = smov 112   ;;  %v679_v11 = vmov 1983009808   ;;  %v680_v14 = vmov 1934713408  }
  0x39   :  { %v146_v12 = vunpack.c.l.s4 %v679_v11  ;;  %v178_v15 = vunpack.c.l.s4 %v680_v14  ;;  %v149_v17 = vshrl.u32 %v148_v13, 7  ;;  %vm211_vm2 = vcmask 60416   ;;  %s681_s24 = smov 16   ;;  %s682_s25 = smov 24  }
  0x3a   :  { %516 = vmatpush3.bf16.msra.mxu0 %v515_v5  ;;  %vm380_vm3 = vcmask 64512   ;;  %vm382_vm4 = vcmask 130048   ;;  %vm384_vm5 = vcmask 195584   ;;  %s683_s26 = smov [#allocation8]  }
  0x3b   :  { %517 = vmatprep.subr.bf16.mxu0 %v673_v0  ;;  %v147_v16 = vunpack.c.0.s8 %v146_v12  ;;  %v179_v20 = vunpack.c.0.s8 %v178_v15  ;;  %s470_s27 = sshll.u32 %s683_s26, 4  ;;  %s471_s27 = int_to_ptr.vmem [resolvable:$true] %s470_s27 }
  0x3c   :  { %p645_p11 = scmp.lt.s32.totalorder %s471_s27, %s471_s27 }
  0x3d   :  { %v752_v21 = vsub.s32 %v147_v16, %v149_v17  ;;  %v754_v27 = vsub.s32 %v179_v20, %v149_v17 }
  0x3e   :  { %519 = vmatpush3.bf16.msra.mxu0 %v518_v7 }
  0x41   :  { %501 = vmatmul.mubr.msk.f32.vlgmr.msra.gmra.mrb[0].mxu0 %vm59_vm1, %v54_v8 }
 0x114   :  { %v129_v9 = vpop.f32.mrb[0].mxu0 }
 0x115   :  { %140 = vrot.lane.b32.xlu1 %v129_v9, %s676_s2  ;;  %134 = vrot.lane.b32.xlu0 %v129_v9, %s677_s21  ;;  %v502_v10 = vpop.f32.mrb[1].mxu0 }
 0x119   :  { %137 = vrot.lane.b32.xlu0 %v129_v9, %s678_s22 }
 0x187   :  { %v141_v18 = vpop.permute.xlu1 %140  ;;  %v135_v19 = vpop.permute.xlu0 %134 }
 0x188   :  { %v159_v22 = vcombine.low %v135_v19, %v141_v18  ;;  %v160_v23 = vcombine.high %v135_v19, %v141_v18 }
 0x18a   :  { %v167_v28 = vrot.slane %v159_v22, %v752_v21  ;;  %v174_v29 = vrot.slane %v160_v23, %v752_v21 }
 0x18b   :  { %v138_v24 = vpop.permute.xlu0 %137 }
 0x18c   :  { %v143_v25 = vcombine.low %v129_v9, %v138_v24  ;;  %v144_v26 = vcombine.high %v129_v9, %v138_v24 }
 0x18e   :  { %v151_v30 = vrot.slane %v143_v25, %v752_v21  ;;  %v158_v31 = vrot.slane %v144_v26, %v752_v21 }
 0x190   :  { %v175_v32 = vcombine.low %v151_v30, %v167_v28  ;;  %v176_v33 = vcombine.high %v151_v30, %v167_v28  ;;  %v191_v34 = vcombine.low %v158_v31, %v174_v29  ;;  %v192_v37 = vcombine.high %v158_v31, %v174_v29  ;;  %v386_v31 = vld [vmem:[#allocation7] sm:$0xff] }
 0x192   :  { %v190_v35 = vrot.slane %v176_v33, %v754_v27  ;;  %v183_v36 = vrot.slane %v175_v32, %v754_v27  ;;  %v199_v40 = vrot.slane %v191_v34, %v754_v27  ;;  %v206_v42 = vrot.slane %v192_v37, %v754_v27  ;;  %v387_v32 = vld [vmem:[#allocation7 + $0x8] sm:$0xff] }
 0x193   :  { %v521_v33 = vpack.c.bf16 %v387_v32, %v386_v31 }
 0x194   :  { %v218_v38 = vsel %vm211_vm2, %v190_v35, -inf  ;;  %v212_v39 = vsel %vm211_vm2, %v183_v36, -inf  ;;  %v208_v41 = vcombine.high %v190_v35, %v675_v1  ;;  %v224_v43 = vsel %vm211_vm2, %v199_v40, -inf }
 0x195   :  { %219 = vmax.xlane.f32.xlu0 %v218_v38  ;;  %213 = vmax.xlane.f32.xlu1 %v212_v39  ;;  %v209_v45 = vcombine.high %v199_v40, %v675_v1  ;;  %v207_v46 = vcombine.high %v183_v36, %v675_v1  ;;  %v210_v49 = vcombine.high %v206_v42, %v675_v1  ;;  %v230_v51 = vsel %vm211_vm2, %v206_v42, -inf }
 0x196   :  { %v221_v44 = vsel %vm211_vm2, %v208_v41, -inf  ;;  %522 = vmatpush3.bf16.msra.mxu1 %v521_v33 }
 0x197   :  { %v227_v47 = vsel %vm211_vm2, %v209_v45, -inf  ;;  %v215_v48 = vsel %vm211_vm2, %v207_v46, -inf  ;;  %v233_v50 = vsel %vm211_vm2, %v210_v49, -inf  ;;  %523 = vmatprep.subr.bf16.mxu1 %v673_v0 }
 0x199   :  { %225 = vmax.xlane.f32.xlu0 %v224_v43  ;;  %222 = vmax.xlane.f32.xlu1 %v221_v44 }
 0x19d   :  { %228 = vmax.xlane.f32.xlu1 %v227_v47  ;;  %216 = vmax.xlane.f32.xlu0 %v215_v48 }
 0x1a1   :  { %234 = vmax.xlane.f32.xlu1 %v233_v50  ;;  %231 = vmax.xlane.f32.xlu0 %v230_v51 }
 0x222   :  { %v220_v52 = vpop.xlane.xlu0 %219  ;;  %v214_v53 = vpop.xlane.xlu1 %213 }
 0x223   :  { %v238_v54 = vsub.f32 %v190_v35, %v220_v52  ;;  %v236_v55 = vsub.f32 %v183_v36, %v214_v53 }
 0x225   :  { %v244_v56 = vmul.f32 1.442695, %v236_v55  ;;  %v248_v57 = vmul.f32 1.442695, %v238_v54 }
 0x226   :  { %v226_v58 = vpop.xlane.xlu0 %225  ;;  %v223_v59 = vpop.xlane.xlu1 %222 }
 0x227   :  { %v240_v60 = vsub.f32 %v199_v40, %v226_v58  ;;  %542 = vpow2.f32 %v244_v56  ;;  %v239_v62 = vsub.f32 %v208_v41, %v223_v59  ;;  %v388_v58 = vld [vmem:[#allocation7 + $0x10] sm:$0xff]  ;;  %v389_v59 = vld [vmem:[#allocation7 + $0x18] sm:$0xff] }
 0x228   :  { %544 = vpow2.f32 %v248_v57 }
 0x229   :  { %v252_v61 = vmul.f32 1.442695, %v240_v60  ;;  %v250_v4 = vmul.f32 1.442695, %v239_v62 }
 0x22a   :  { %v229_v63 = vpop.xlane.xlu1 %228  ;;  %v217_v1 = vpop.xlane.xlu0 %216 }
 0x22b   :  { %v237_v2 = vsub.f32 %v207_v46, %v217_v1  ;;  %546 = vpow2.f32 %v252_v61  ;;  %v241_v5 = vsub.f32 %v209_v45, %v229_v63  ;;  %v524_v63 = vpack.c.bf16 %v389_v59, %v388_v58 }
 0x22d   :  { %v246_v3 = vmul.f32 1.442695, %v237_v2  ;;  %v254_v11 = vmul.f32 1.442695, %v241_v5  ;;  %525 = vmatpush3.bf16.msra.mxu1 %v524_v63 }
 0x22e   :  { %v232_v6 = vpop.xlane.xlu0 %231  ;;  %v235_v7 = vpop.xlane.xlu1 %234 }
 0x22f   :  { %v242_v8 = vsub.f32 %v206_v42, %v232_v6  ;;  %548 = vpow2.f32 %v246_v3  ;;  %v243_v12 = vsub.f32 %v210_v49, %v235_v7 }
 0x230   :  { %550 = vpow2.f32 %v250_v4 }
 0x231   :  { %v256_v9 = vmul.f32 1.442695, %v242_v8  ;;  %v543_v10 = vpop.eup %542  ;;  %v258_v15 = vmul.f32 1.442695, %v243_v12 }
 0x232   :  { %v260_v13 = vsel %vm211_vm2, %v543_v10, 0.0  ;;  %v545_v14 = vpop.eup %544 }
 0x233   :  { %552 = vpow2.f32 %v256_v9  ;;  %261 = vadd.xlane.f32.xlu0 %v260_v13  ;;  %v266_v16 = vsel %vm211_vm2, %v545_v14, 0.0 }
 0x234   :  { %554 = vpow2.f32 %v254_v11 }
 0x235   :  { %v547_v17 = vpop.eup %546  ;;  %556 = vpow2.f32 %v258_v15 }
 0x236   :  { %v272_v19 = vsel %vm211_vm2, %v547_v17, 0.0 }
 0x237   :  { %267 = vadd.xlane.f32.xlu0 %v266_v16 }
 0x239   :  { %v549_v18 = vpop.eup %548 }
 0x23a   :  { %v263_v20 = vsel %vm211_vm2, %v549_v18, 0.0  ;;  %v551_v22 = vpop.eup %550 }
 0x23b   :  { %273 = vadd.xlane.f32.xlu0 %v272_v19  ;;  %264 = vadd.xlane.f32.xlu1 %v263_v20  ;;  %v269_v24 = vsel %vm211_vm2, %v551_v22, 0.0 }
 0x23d   :  { %v553_v23 = vpop.eup %552 }
 0x23e   :  { %v278_v25 = vsel %vm211_vm2, %v553_v23, 0.0  ;;  %v555_v26 = vpop.eup %554 }
 0x23f   :  { %270 = vadd.xlane.f32.xlu1 %v269_v24  ;;  %279 = vadd.xlane.f32.xlu0 %v278_v25  ;;  %v275_v28 = vsel %vm211_vm2, %v555_v26, 0.0  ;;  %v557_v29 = vpop.eup %556 }
 0x240   :  { %v281_v30 = vsel %vm211_vm2, %v557_v29, 0.0 }
 0x243   :  { %276 = vadd.xlane.f32.xlu1 %v275_v28 }
 0x247   :  { %282 = vadd.xlane.f32.xlu1 %v281_v30 }
 0x2c0   :  { %v262_v34 = vpop.xlane.xlu0 %261 }
 0x2c4   :  { %v268_v35 = vpop.xlane.xlu0 %267 }
 0x2c5   :  { %558 = vrcp.f32 %v268_v35 }
 0x2c8   :  { %v265_v36 = vpop.xlane.xlu1 %264  ;;  %v274_v37 = vpop.xlane.xlu0 %273 }
 0x2c9   :  { %560 = vrcp.f32 %v265_v36 }
 0x2cc   :  { %v271_v38 = vpop.xlane.xlu1 %270  ;;  %v280_v39 = vpop.xlane.xlu0 %279 }
 0x2cd   :  { %562 = vrcp.f32 %v271_v38 }
 0x2ce   :  { %564 = vrcp.f32 %v280_v39 }
 0x2cf   :  { %566 = vrcp.f32 %v262_v34  ;;  %v559_v42 = vpop.eup %558 }
 0x2d0   :  { %568 = vrcp.f32 %v274_v37  ;;  %v277_v40 = vpop.xlane.xlu1 %276  ;;  %v294_v48 = vmul.f32 %v559_v42, %v545_v14 }
 0x2d1   :  { %570 = vrcp.f32 %v277_v40 }
 0x2d3   :  { %v561_v43 = vpop.eup %560 }
 0x2d4   :  { %v283_v41 = vpop.xlane.xlu1 %282  ;;  %v293_v49 = vmul.f32 %v561_v43, %v549_v18 }
 0x2d5   :  { %572 = vrcp.f32 %v283_v41 }
 0x2d7   :  { %v563_v44 = vpop.eup %562 }
 0x2d8   :  { %v565_v0 = vpop.eup %564  ;;  %v295_v45 = vmul.f32 %v563_v44, %v551_v22 }
 0x2d9   :  { %v567_v46 = vpop.eup %566  ;;  %v298_v50 = vmul.f32 %v565_v0, %v553_v23 }
 0x2da   :  { %v569_v47 = vpop.eup %568  ;;  %v292_v51 = vmul.f32 %v567_v46, %v543_v10  ;;  %v308_v52 = vcombine.low %v293_v49, %v295_v45 }
 0x2db   :  { %v571_v53 = vpop.eup %570  ;;  %v296_v54 = vmul.f32 %v569_v47, %v547_v17 }
 0x2dc   :  { %v300_v55 = vcombine.low %v292_v51, %v294_v48  ;;  %v297_v60 = vmul.f32 %v571_v53, %v555_v26  ;;  %v315_v62 = vrot.slane %v308_v52, %v752_v21 }
 0x2dd   :  { %v316_v57 = vcombine.low %v296_v54, %v298_v50 }
 0x2de   :  { %v307_v1 = vrot.slane %v300_v55, %v752_v21 }
 0x2df   :  { %v573_v56 = vpop.eup %572  ;;  %v323_v3 = vrot.slane %v316_v57, %v752_v21 }
 0x2e0   :  { %v299_v61 = vmul.f32 %v573_v56, %v557_v29  ;;  %v333_v5 = vcombine.high %v307_v1, %v315_v62  ;;  %v332_v6 = vcombine.low %v307_v1, %v315_v62 }
 0x2e2   :  { %v324_v2 = vcombine.low %v297_v60, %v299_v61  ;;  %v347_v9 = vrot.slane %v333_v5, %v754_v27  ;;  %v340_v11 = vrot.slane %v332_v6, %v754_v27 }
 0x2e4   :  { %v331_v4 = vrot.slane %v324_v2, %v752_v21 }
 0x2e6   :  { %v349_v7 = vcombine.high %v323_v3, %v331_v4  ;;  %v348_v8 = vcombine.low %v323_v3, %v331_v4 }
 0x2e8   :  { %v363_v10 = vrot.slane %v349_v7, %v754_v27  ;;  %v356_v12 = vrot.slane %v348_v8, %v754_v27 }
 0x2ea   :  { %v366_v13 = vcombine.low %v347_v9, %v363_v10  ;;  %v365_v14 = vcombine.high %v340_v11, %v356_v12  ;;  %v364_v15 = vcombine.low %v340_v11, %v356_v12  ;;  %v367_v21 = vcombine.high %v347_v9, %v363_v10 }
 0x2ec   :  { %373 = vrot.lane.b32.xlu1 %v366_v13, %s681_s24  ;;  %369 = vrot.lane.b32.xlu0 %v365_v14, %s670_s23  ;;  %s640_s23 = scalar_lea.vmem %s471_s27, 128 }
 0x2ed   :  { %p641_p10 = scmp.ne.s32.totalorder %s471_s27, %s640_s23  ;;  %p646_p12 = scmp.lt.s32.totalorder %s640_s23, %s640_s23 }
 0x2ef   :  { %p647_p13 = por %p646_p12, %p645_p11 }
 0x2f0   :  { %377 = vrot.lane.b32.xlu1 %v367_v21, %s682_s25 }
 0x2f1   :  { %p648_p0 = pnand %p647_p13, %p641_p10 }
 0x35e   :  { %v374_v16 = vpop.permute.xlu1 %373  ;;  %v370_v17 = vpop.permute.xlu0 %369 }
 0x35f   :  { %v381_v18 = vsel %vm380_vm3, %v364_v15, %v370_v17 }
 0x360   :  { %v383_v20 = vsel %vm382_vm4, %v381_v18, %v374_v16 }
 0x362   :  { %v378_v19 = vpop.permute.xlu1 %377 }
 0x363   :  { %v385_v22 = vsel %vm384_vm5, %v383_v20, %v378_v19 }
 0x364   :  { %512 = vmatmul.mubr.msk.f32.vlgmr.msra.gmra.mrb[0].mxu1 %vm59_vm1, %v385_v22 }
 0x437   :  { %v459_v27 = vpop.f32.mrb[0].mxu1 }
 0x438   :  { %463 = vst [vmem:[#allocation8] sm:$0xff] %v459_v27  ;;  %v513_v23 = vpop.f32.mrb[1].mxu1 }
 0x439   :  { %651 = shalt.err (!%p648_p0)
}
 0x43a   :  { %s652_s30 = scalar_lea.hbm %s810_s3, 128 }
 0x43b   :  { %p653_p1 = scmp.ne.s32.totalorder %s810_s3, %s652_s30  ;;  %p656_p2 = scmp.lt.u32.totalorder %s652_s30, %s810_s3 }
 0x43d   :  { %p658_p3 = pnand %p656_p2, %p653_p1 }
 0x43f   :  { %661 = shalt.err (!%p658_p3)
}
 0x440   :  { %473 = dma.vmem_to_hbm [thread:$0]  %s471_s27, 128, %s810_s3, [#allocation4]  }
 0x441   :  { %666 = dma.done.wait [#allocation4], 128  }
 0x442   :  { %667 = vsyncadd [#allocation4], 4294967168 }
 0x443   :  { %477 = vsyncpa [#allocation3], 1 }
 0x444   :  { %478 = vsyncpa [#allocation6], 1 }
 0x445   :  { %479 = vsyncpa [#allocation4], 1 }

</bundles_post_ra>
